<compile_context>
chip_gen: v6e
topology: v6e:2x2x1
jax: 0.10.0
libtpu: 0.0.40
codegen_flags: <defaults>
</compile_context>

<pallas_src>
import functools

import jax
import jax.numpy as jnp
from jax import lax
from jax.experimental import pallas as pl
from jax.experimental.pallas import tpu as pltpu

ALPHA = 0.25   # alpha for class 0; class 1 gets 1 - ALPHA (torch alpha.gather)
GAMMA = 2      # static integer exponent, written as explicit multiplies


def _focal_loss_kernel(n_ref, p_ref, t_ref, out_ref, acc_ref, *,
                       valid_rows, row_block, need_row_mask):
    """Grid = (num_cores, steps): axis 0 'parallel' (megacore), axis 1 'arbitrary'."""
    c = pl.program_id(0)
    i = pl.program_id(1)
    steps = pl.num_programs(1)

    @pl.when(i == 0)
    def _init():
        acc_ref[...] = jnp.zeros_like(acc_ref)

    p = p_ref[...].astype(jnp.float32)       # (tr, lane); bf16 inputs upcast here
    is_pos = t_ref[...] != 0                 # int32 targets, single compare

    # Binary targets: pt = p if t==1 else 1-p; BCE = min(-log(pt), 100) (same
    # clamp as torch BCELoss).  The BCE negation is folded into the alpha
    # constants:  at * (1-pt)^2 * BCE == (-at) * (1-pt)^2 * max(log(pt), -100).
    pt = jnp.where(is_pos, p, 1.0 - p)
    neg_at = jnp.where(is_pos, -(1.0 - ALPHA), -ALPHA)
    log_pt = jnp.maximum(jnp.log(pt), -100.0)    # single EUP transcendental/elem
    omp = 1.0 - pt
    contrib = neg_at * omp * omp * log_pt        # >= 0; GAMMA==2 as 2 multiplies

    if need_row_mask:
        # Rows at/after `valid_rows` are OOB garbage from the partial last block
        # (or a clamped redundant block); zero them with a select (NaN-safe).
        thresh = valid_rows - (c * steps + i) * row_block
        rid = lax.broadcasted_iota(jnp.int32, contrib.shape, 0)
        contrib = jnp.where(rid < thresh, contrib, 0.0)

    # Fold (tr, lane) -> (8, lane) with vreg-vs-vreg adds only (no XLU), then
    # accumulate into the small persistent scratch.
    tr, lane = contrib.shape
    acc_ref[...] += contrib.reshape(tr // 8, 8, lane).sum(axis=0)

    @pl.when(i == steps - 1)
    def _finalize():
        # One cross-lane/sublane reduction per core; divide by the true N taken
        # from the SMEM scalar-prefetch operand (kept as vector ops for safety).
        total = jnp.full(out_ref.shape, jnp.sum(acc_ref[...]), jnp.float32)
        n_f = jnp.full(out_ref.shape, n_ref[0], jnp.int32).astype(jnp.float32)
        out_ref[...] = (total / n_f).astype(out_ref.dtype)


def _default_num_cores():
    try:
        kind = jax.devices()[0].device_kind.lower().replace(" ", "")
    except Exception:
        return 1
    # 2 fused TensorCores per device on v4 / v5p / v7x; 1 on v5e / v6e.
    return 2 if any(s in kind for s in ("v4", "v5p", "v7")) else 1


def focal_loss(inputs, targets, *, num_cores=None, block_elems=1 << 20):
    """Mean focal loss over N elements.

    inputs : (N,) or (N, 1) probabilities in [0, 1]; float32 or bfloat16 pass
             straight to the kernel (bf16 is upcast after the load).
    targets: (N,) binary class ids in {0, 1}; int32 is the zero-copy path.
    """
    p = inputs.reshape(-1)
    if not (p.dtype == jnp.float32 or p.dtype == jnp.bfloat16):
        p = p.astype(jnp.float32)
    t = targets.reshape(-1)
    if t.dtype != jnp.int32:
        t = t.astype(jnp.int32)
    n = p.shape[0]
    if num_cores is None:
        num_cores = _default_num_cores()

    # bf16 packs 16 rows per native sublane tile; f32 packs 8.
    min_tr = 16 if p.dtype == jnp.bfloat16 else 8

    # Lane width: largest power of two <= 2048 that divides N (free bitcast
    # reshape, no copy) while leaving at least `min_tr` rows; else 128.
    lane = 2048
    while lane > 128 and (n % lane != 0 or n < min_tr * lane):
        lane //= 2
    rows = max(-(-n // lane), min_tr)
    total = rows * lane
    if total != n:
        # TODO(synk): this tail pad is one extra read+write pass over the inputs;
        # it is only hit when N % 128 != 0 (or N < min_tr*128), which BlockSpec
        # cannot express.  Pad values (p=1, t=1) contribute exactly zero.
        p = jnp.pad(p, (0, total - n), constant_values=1)
        t = jnp.pad(t, (0, total - n), constant_values=1)
    p2d = p.reshape(rows, lane)
    t2d = t.reshape(rows, lane)

    if rows < min_tr * num_cores:
        num_cores = 1
    # ~block_elems elements per tile (~4 MiB f32) -> near the HBM-roofline knee.
    tr = max(min_tr, min(block_elems // lane, 8192) // min_tr * min_tr)
    while tr > min_tr and num_cores * tr > rows:
        tr //= 2
    steps = -(-rows // (num_cores * tr))
    last_block = (rows - 1) // tr                 # clamp target for redundant blocks
    need_row_mask = (num_cores * steps * tr) != rows

    def in_map(c, i, n_smem):                     # n_smem: scalar-prefetch ref (unused)
        return (jnp.minimum(c * steps + i, last_block), 0)

    kernel = functools.partial(
        _focal_loss_kernel,
        valid_rows=rows, row_block=tr, need_row_mask=need_row_mask)

    grid_spec = pltpu.PrefetchScalarGridSpec(
        num_scalar_prefetch=1,
        grid=(num_cores, steps),
        in_specs=[pl.BlockSpec((tr, lane), in_map),
                  pl.BlockSpec((tr, lane), in_map)],
        out_specs=pl.BlockSpec((1, 8, 128), lambda c, i, n_smem: (c, 0, 0)),
        scratch_shapes=[pltpu.VMEM((8, lane), jnp.float32)],
    )

    partials = pl.pallas_call(
        kernel,
        out_shape=jax.ShapeDtypeStruct((num_cores, 8, 128), jnp.float32),
        grid_spec=grid_spec,
        compiler_params=pltpu.CompilerParams(
            dimension_semantics=("parallel", "arbitrary"),
            vmem_limit_bytes=32 * 1024 * 1024,
        ),
    )(jnp.array([n], jnp.int32), p2d, t2d)

    # Per-core partials are already divided by the true N; summing gives the mean.
    return jnp.sum(partials[:, 0, 0])


def focal_loss_ref(inputs, targets):
    """Pure-JAX reference mirroring the PyTorch module exactly."""
    p = inputs.astype(jnp.float32).reshape(-1)
    tf = targets.reshape(-1).astype(jnp.float32)
    log_p = jnp.maximum(jnp.log(p), -100.0)
    log_1mp = jnp.maximum(jnp.log(1.0 - p), -100.0)
    bce = -(tf * log_p + (1.0 - tf) * log_1mp)
    at = jnp.where(targets.reshape(-1) != 0, 1.0 - ALPHA, ALPHA)
    pt = jnp.exp(-bce)
    return jnp.mean(at * (1.0 - pt) ** GAMMA * bce)


if __name__ == "__main__":
    key = jax.random.PRNGKey(0)
    cases = [
        (257,   jnp.float32,  None),  # tiny: tail-pad path, single block
        (4096,  jnp.float32,  None),  # zero-copy bitcast reshape, single block
        (20000, jnp.float32,  None),  # ragged rows -> in-kernel row masking
        (40960, jnp.float32,  2),     # forced 2-core split + clamped redundant block
        (16384, jnp.bfloat16, None),  # bf16 activations, zero-copy path
    ]
    for n, dt, cores in cases:
        k1, k2, key = jax.random.split(key, 3)
        inputs = jax.nn.sigmoid(
            jax.random.normal(k1, (n, 1), dtype=jnp.float32)).astype(dt)
        targets = jax.random.bernoulli(k2, 0.5, (n,)).astype(jnp.int32)

        loss = jax.block_until_ready(focal_loss(inputs, targets, num_cores=cores))
        ref = jax.block_until_ready(focal_loss_ref(inputs, targets))

        assert jnp.allclose(loss, ref, rtol=2e-4, atol=1e-6), (n, str(dt), loss, ref)

    print("KERNEL_OK")
</pallas_src>

<mosaic_0001>
module attributes {stable_mosaic.version = 11 : i64} {
  func.func @_focal_loss_kernel(%arg0: i32, %arg1: i32, %arg2: memref<1xi32, #tpu.memory_space<smem>>, %arg3: memref<8x128xf32, #tpu.memory_space<vmem>>, %arg4: memref<8x128xi32, #tpu.memory_space<vmem>>, %arg5: memref<1x8x128xf32, #tpu.memory_space<vmem>>, %arg6: memref<8x128xf32, #tpu.memory_space<vmem>>) attributes {dimension_semantics = [#tpu.dimension_semantics<parallel>, #tpu.dimension_semantics<arbitrary>], iteration_bounds = array<i64: 1, 1>, scalar_prefetch = 1 : i64, scratch_operands = 1 : i64, tpu.core_type = #tpu.core_type<tc>, window_params = [{transform_indices = @transform_0, window_bounds = array<i64: 8, 128>}, {transform_indices = @transform_1, window_bounds = array<i64: 8, 128>}, {transform_indices = @transform_2, window_bounds = array<i64: 1, 8, 128>}]} {
    %c0_i32 = arith.constant 0 : i32
    %0 = arith.cmpi eq, %arg1, %c0_i32 : i32
    %1 = arith.extui %0 : i1 to i32
    %c0_i32_0 = arith.constant 0 : i32
    %2 = arith.cmpi ne, %1, %c0_i32_0 : i32
    scf.if %2 {
      %cst_16 = arith.constant 0.000000e+00 : f32
      %29 = vector.broadcast %cst_16 : f32 to vector<8x128xf32>
      %c0_17 = arith.constant 0 : index
      %c0_18 = arith.constant 0 : index
      %30 = vector.load %arg6[%c0_17, %c0_18] : memref<8x128xf32, #tpu.memory_space<vmem>>, vector<8x128xf32>
      tpu.vector_store %arg6[%c0_17, %c0_18], %29 {strides = array<i32>} : memref<8x128xf32, #tpu.memory_space<vmem>>, vector<8x128xf32>,
    } else {
    }
    %c0 = arith.constant 0 : index
    %c0_1 = arith.constant 0 : index
    %3 = vector.load %arg3[%c0, %c0_1] : memref<8x128xf32, #tpu.memory_space<vmem>>, vector<8x128xf32>
    %c0_2 = arith.constant 0 : index
    %c0_3 = arith.constant 0 : index
    %4 = vector.load %arg4[%c0_2, %c0_3] : memref<8x128xi32, #tpu.memory_space<vmem>>, vector<8x128xi32>
    %c0_i32_4 = arith.constant 0 : i32
    %5 = vector.broadcast %c0_i32_4 : i32 to vector<8x128xi32>
    %6 = arith.cmpi ne, %4, %5 : vector<8x128xi32>
    %cst = arith.constant 1.000000e+00 : f32
    %7 = vector.broadcast %cst : f32 to vector<8x128xf32>
    %8 = arith.subf %7, %3 : vector<8x128xf32>
    %9 = arith.select %6, %3, %8 : vector<8x128xi1>, vector<8x128xf32>
    %cst_5 = arith.constant -7.500000e-01 : f32
    %cst_6 = arith.constant -2.500000e-01 : f32
    %10 = vector.broadcast %cst_5 : f32 to vector<8x128xf32>
    %11 = vector.broadcast %cst_6 : f32 to vector<8x128xf32>
    %12 = arith.select %6, %10, %11 : vector<8x128xi1>, vector<8x128xf32>
    %13 = math.log %9 : vector<8x128xf32>
    %cst_7 = arith.constant -1.000000e+02 : f32
    %14 = vector.broadcast %cst_7 : f32 to vector<8x128xf32>
    %15 = arith.maximumf %13, %14 : vector<8x128xf32>
    %cst_8 = arith.constant 1.000000e+00 : f32
    %16 = vector.broadcast %cst_8 : f32 to vector<8x128xf32>
    %17 = arith.subf %16, %9 : vector<8x128xf32>
    %18 = arith.mulf %12, %17 : vector<8x128xf32>
    %19 = arith.mulf %18, %17 : vector<8x128xf32>
    %20 = arith.mulf %19, %15 : vector<8x128xf32>
    %c0_9 = arith.constant 0 : index
    %c0_10 = arith.constant 0 : index
    %21 = vector.load %arg6[%c0_9, %c0_10] : memref<8x128xf32, #tpu.memory_space<vmem>>, vector<8x128xf32>
    %22 = vector.shape_cast %20 : vector<8x128xf32> to vector<1x8x128xf32>
    %cst_11 = arith.constant dense<0.000000e+00> : vector<8x128xf32>
    %23 = vector.multi_reduction <add>, %22, %cst_11 [0] : vector<1x8x128xf32> to vector<8x128xf32>
    %24 = arith.addf %21, %23 : vector<8x128xf32>
    %c0_12 = arith.constant 0 : index
    %c0_13 = arith.constant 0 : index
    %25 = vector.load %arg6[%c0_12, %c0_13] : memref<8x128xf32, #tpu.memory_space<vmem>>, vector<8x128xf32>
    tpu.vector_store %arg6[%c0_12, %c0_13], %24 {strides = array<i32>} : memref<8x128xf32, #tpu.memory_space<vmem>>, vector<8x128xf32>,
    %c0_i32_14 = arith.constant 0 : i32
    %26 = arith.cmpi eq, %arg1, %c0_i32_14 : i32
    %27 = arith.extui %26 : i1 to i32
    %c0_i32_15 = arith.constant 0 : i32
    %28 = arith.cmpi ne, %27, %c0_i32_15 : i32
    scf.if %28 {
      %c0_16 = arith.constant 0 : index
      %c0_17 = arith.constant 0 : index
      %29 = vector.load %arg6[%c0_16, %c0_17] : memref<8x128xf32, #tpu.memory_space<vmem>>, vector<8x128xf32>
      %30 = vector.shape_cast %29 : vector<8x128xf32> to vector<1x8x128xf32>
      %cst_18 = arith.constant dense<0.000000e+00> : vector<1xf32>
      %31 = vector.multi_reduction <add>, %30, %cst_18 [1, 2] : vector<1x8x128xf32> to vector<1xf32>
      %32 = vector.shape_cast %31 : vector<1xf32> to vector<1x1x1xf32>
      %33 = vector.extract %32[0, 0, 0] : f32 from vector<1x1x1xf32>
      %34 = vector.broadcast %33 : f32 to vector<1x8x128xf32>
      %c0_19 = arith.constant 0 : index
      %35 = memref.load %arg2[%c0_19] : memref<1xi32, #tpu.memory_space<smem>>
      %36 = vector.broadcast %35 : i32 to vector<1x8x128xi32>
      %37 = arith.sitofp %36 : vector<1x8x128xi32> to vector<1x8x128xf32>
      %38 = arith.divf %34, %37 : vector<1x8x128xf32>
      %c0_20 = arith.constant 0 : index
      %c0_21 = arith.constant 0 : index
      %c0_22 = arith.constant 0 : index
      %39 = vector.load %arg5[%c0_20, %c0_21, %c0_22] : memref<1x8x128xf32, #tpu.memory_space<vmem>>, vector<1x8x128xf32>
      tpu.vector_store %arg5[%c0_20, %c0_21, %c0_22], %38 {strides = array<i32>} : memref<1x8x128xf32, #tpu.memory_space<vmem>>, vector<1x8x128xf32>,
    } else {
    }
    return
  }
  func.func @transform_0(%arg0: i32, %arg1: i32, %arg2: memref<1xi32, #tpu.memory_space<smem>>) -> (i32, i32) {
    %c1_i32 = arith.constant 1 : i32
    %0 = arith.muli %arg0, %c1_i32 : i32
    %1 = arith.addi %0, %arg1 : i32
    %c0_i32 = arith.constant 0 : i32
    %2 = arith.minsi %1, %c0_i32 : i32
    %c0_i32_0 = arith.constant 0 : i32
    %c0_i32_1 = arith.constant 0 : i32
    return %2, %c0_i32_0 : i32, i32
  }
  func.func @transform_1(%arg0: i32, %arg1: i32, %arg2: memref<1xi32, #tpu.memory_space<smem>>) -> (i32, i32) {
    %c1_i32 = arith.constant 1 : i32
    %0 = arith.muli %arg0, %c1_i32 : i32
    %1 = arith.addi %0, %arg1 : i32
    %c0_i32 = arith.constant 0 : i32
    %2 = arith.minsi %1, %c0_i32 : i32
    %c0_i32_0 = arith.constant 0 : i32
    %c0_i32_1 = arith.constant 0 : i32
    return %2, %c0_i32_0 : i32, i32
  }
  func.func @transform_2(%arg0: i32, %arg1: i32, %arg2: memref<1xi32, #tpu.memory_space<smem>>) -> (i32, i32, i32) {
    %c0_i32 = arith.constant 0 : i32
    %c0_i32_0 = arith.constant 0 : i32
    %c0_i32_1 = arith.constant 0 : i32
    return %arg0, %c0_i32, %c0_i32_0 : i32, i32, i32
  }
}

</mosaic_0001>

<bundles_post_ra>
// kernel: tpu_custom_call.1
= control target key start
LH: loop header
LB: loop body
LE: loop exit
PB: predicated region body
PF: predicated region fallthrough
CT: control target
= control target key end

     0   :  { %9 = vsyncpa [#allocation6], 0  ;;  %s228_s0 = inlined_call_operand.<no memory space> [shape: s32[1], index: 0, kind: input, shape index: {}]   ;;  %s229_s1 = inlined_call_operand.hbm [shape: f32[8,128], index: 1, kind: input, shape index: {}]   ;;  %s230_s2 = inlined_call_operand.hbm [shape: s32[8,128], index: 2, kind: input, shape index: {}]   ;;  %s231_s3 = inlined_call_operand.hbm [shape: f32[1,8,128], index: 3, kind: output, shape index: {}]  }
   0x1   :  { %10 = vsyncpa [#allocation9], 0 }
   0x2   :  { %11 = vsyncpa [#allocation7], 0  ;;  %s192_s12 = smov [#allocation5]   ;;  %s193_s14 = smov [#allocation8]  }
   0x3   :  { %s23_s13 = sshll.u32 %s192_s12, 4  ;;  %s38_s15 = sshll.u32 %s193_s14, 4  ;;  %s24_s13 = int_to_ptr.vmem [resolvable:$true] %s23_s13  ;;  %s39_s15 = int_to_ptr.vmem [resolvable:$true] %s38_s15 }
   0x4   :  { %s134_s16 = scalar_lea.vmem %s24_s13, 128  ;;  %p139_p1 = scmp.lt.s32.totalorder %s24_s13, %s24_s13 }
   0x5   :  { %p135_p0 = scmp.ne.s32.totalorder %s24_s13, %s134_s16  ;;  %p140_p2 = scmp.lt.s32.totalorder %s134_s16, %s134_s16 }
   0x7   :  { %p141_p3 = por %p140_p2, %p139_p1 }
   0x9   :  { %p142_p4 = pnand %p141_p3, %p135_p0 }
   0xb   :  { %145 = shalt.err (!%p142_p4)
}
   0xc   :  { %26 = dma.hbm_to_vmem [thread:$0]  %s229_s1, 128, %s24_s13, [#allocation6]  }
   0xd   :  { %s154_s19 = scalar_lea.vmem %s39_s15, 128  ;;  %p159_p6 = scmp.lt.s32.totalorder %s39_s15, %s39_s15 }
   0xe   :  { %p155_p5 = scmp.ne.s32.totalorder %s39_s15, %s154_s19  ;;  %p160_p7 = scmp.lt.s32.totalorder %s154_s19, %s154_s19 }
  0x10   :  { %p161_p8 = por %p160_p7, %p159_p6 }
  0x12   :  { %p162_p9 = pnand %p161_p8, %p155_p5 }
  0x14   :  { %165 = shalt.err (!%p162_p9)
}
  0x15   :  { %41 = dma.hbm_to_vmem [thread:$0]  %s230_s2, 128, %s39_s15, [#allocation9]  }
  0x16   :  { %186 = dma.done.wait [#allocation6], 128  }
  0x17   :  { %187 = vsyncadd [#allocation6], 4294967168 }
  0x18   :  { %188 = dma.done.wait [#allocation9], 128  }
  0x19   :  { %189 = vsyncadd [#allocation9], 4294967168  ;;  %v59_v0 = vld [vmem:[#allocation5] sm:$0xff]  ;;  %v60_v1 = vld [vmem:[#allocation8] sm:$0xff]  ;;  %v194_v5 = vmov -0.25   ;;  %v91_v20 = vstv %s228_s0  ;;  %s195_s22 = smov [#allocation10]  }
  0x1a   :  { %vm61_vm0 = vcmp.ne.s32.totalorder %v60_v1, 0  ;;  %v62_v2 = vsub.f32 1.0, %v59_v0  ;;  %v92_v21 = vcvt.s32.f32 %v91_v20  ;;  %s102_s23 = sshll.u32 %s195_s22, 4  ;;  %s103_s23 = int_to_ptr.vmem [resolvable:$true] %s102_s23 }
  0x1b   :  { %v64_v6 = vsel %vm61_vm0, -0.75, %v194_v5  ;;  %s166_s25 = scalar_lea.vmem %s103_s23, 128  ;;  %p171_p11 = scmp.lt.s32.totalorder %s103_s23, %s103_s23 }
  0x1c   :  { %v63_v3 = vsel %vm61_vm0, %v59_v0, %v62_v2  ;;  %p167_p10 = scmp.ne.s32.totalorder %s103_s23, %s166_s25  ;;  %p172_p12 = scmp.lt.s32.totalorder %s166_s25, %s166_s25 }
  0x1d   :  { %122 = vlog2.f32 %v63_v3  ;;  %v68_v4 = vsub.f32 1.0, %v63_v3 }
  0x1e   :  { %124 = vrcp.f32 %v92_v21  ;;  %p173_p13 = por %p172_p12, %p171_p11 }
  0x1f   :  { %v69_v7 = vmul.f32 %v68_v4, %v64_v6 }
  0x20   :  { %p174_p0 = pnand %p173_p13, %p167_p10 }
  0x21   :  { %v70_v10 = vmul.f32 %v69_v7, %v68_v4 }
  0x2a   :  { %v123_v8 = vpop.eup %122 }
  0x2b   :  { %v66_v9 = vmul.f32 0.6931472, %v123_v8  ;;  %v125_v22 = vpop.eup %124 }
  0x2d   :  { %v67_v11 = vmax.f32 %v66_v9, -100.0 }
  0x2f   :  { %v71_v12 = vmul.f32 %v70_v10, %v67_v11 }
  0x31   :  { %80 = vadd.xlane.f32.xlu0 %v71_v12 }
  0xba   :  { %v81_v13 = vpop.xlane.xlu0 %80 }
  0xbb   :  { %v82_v14 = vrot.slane %v81_v13, 4 }
  0xbd   :  { %v83_v15 = vadd.f32 %v82_v14, %v81_v13 }
  0xbf   :  { %v84_v16 = vrot.slane %v83_v15, 2 }
  0xc1   :  { %v85_v17 = vadd.f32 %v84_v16, %v83_v15 }
  0xc3   :  { %v86_v18 = vrot.slane %v85_v17, 1 }
  0xc5   :  { %v87_v19 = vadd.f32 %v86_v18, %v85_v17 }
  0xc7   :  { %116 = vpush %v87_v19 }
  0xf8   :  { %s117_s24 = spop %116 }
  0xf9   :  { %v89_v23 = vstv %s117_s24 }
  0xfa   :  { %v94_v24 = vmul.f32 %v125_v22, %v89_v23 }
  0xfc   :  { %95 = vst [vmem:[#allocation10] sm:$0xff] %v94_v24 }
  0xfd   :  { %177 = shalt.err (!%p174_p0)
}
  0xfe   :  { %105 = dma.vmem_to_hbm [thread:$0]  %s103_s23, 128, %s231_s3, [#allocation7]  }
  0xff   :  { %190 = dma.done.wait [#allocation7], 128  }
 0x100   :  { %191 = vsyncadd [#allocation7], 4294967168 }
 0x101   :  { %109 = vsyncpa [#allocation6], 1 }
 0x102   :  { %110 = vsyncpa [#allocation9], 1 }
 0x103   :  { %111 = vsyncpa [#allocation7], 1 }

</bundles_post_ra>
